<compile_context>
chip_gen: v6e
topology: v6e:2x2x1
jax: 0.10.0
libtpu: 0.0.40
codegen_flags: <defaults>
</compile_context>

<pallas_src>
import functools

import jax
import jax.numpy as jnp
from jax.experimental import pallas as pl
from jax.experimental.pallas import tpu as pltpu


def _output_layer_kernel(x_ref, w1_ref, b1_ref, w2_ref, b2_ref, w3_ref, b3_ref,
                         o_ref):
    # One tile of nodes: x_ref is (tile_n, H). Weights/biases are fully resident.
    x = x_ref[...]                                   # native dtype straight into the MXU

    # ffn layer 1: Linear(H -> H*mult) + GELU (f32 accumulation).
    h = jnp.dot(x, w1_ref[...], preferred_element_type=jnp.float32)
    h = h + b1_ref[...].astype(jnp.float32)
    h = jax.nn.gelu(h)                               # f32 on VPU/EUP
    # (mlp_dropout is identity in eval mode)

    # ffn layer 2: Linear(H*mult -> H).
    h = h.astype(w2_ref.dtype)                       # keep the MXU on the fast (bf16) path
    h = jnp.dot(h, w2_ref[...], preferred_element_type=jnp.float32)
    h = h + b2_ref[...].astype(jnp.float32)

    # final_output: Linear(H -> out_pad), lane-dense (out_pad is a 128-multiple).
    h = h.astype(w3_ref.dtype)
    out = jnp.dot(h, w3_ref[...], preferred_element_type=jnp.float32)
    out = out + b3_ref[...].astype(jnp.float32)
    o_ref[...] = out.astype(o_ref.dtype)


def _round_up(x, m):
    return ((x + m - 1) // m) * m


@functools.partial(jax.jit, static_argnames=("tile_n",))
def output_layer_forward(features, w1, b1, w2, b2, w3, b3, *, tile_n=256):
    """features: [num_nodes, H] or [num_nodes, max_neighbor, H]."""
    orig_shape = features.shape
    hidden = orig_shape[-1]
    x2d = features.reshape(-1, hidden)
    n = x2d.shape[0]

    hid_mult = w1.shape[1]
    out_dim = w3.shape[1]

    # Lane-dense output: pad the final projection to a multiple of 128 lanes so
    # the output stores are full-width `vst` (not masked partial stores) and the
    # third matmul uses a full MXU N pass. Zero columns are sliced off below.
    out_pad = _round_up(max(out_dim, 128), 128)
    if out_pad != out_dim:
        w3 = jnp.pad(w3, ((0, 0), (0, out_pad - out_dim)))
        b3 = jnp.pad(b3, ((0, 0), (0, out_pad - out_dim)))

    # Node tile: as large as requested, clamped to the (8-rounded) problem size.
    # Ragged tail handled by a cdiv grid (Pallas masks OOB reads/writes); no
    # wrapper-side pad / extra HBM copy of x.
    tile_eff = max(8, (min(tile_n, _round_up(n, 8)) // 8) * 8)
    grid = (pl.cdiv(n, tile_eff),)

    # VMEM budget: double-buffered x/out tiles + resident weights + f32 temps.
    w_dt = jnp.dtype(w1.dtype).itemsize
    x_dt = jnp.dtype(features.dtype).itemsize
    weight_bytes = (w1.size + b1.size + w2.size + b2.size + w3.size + b3.size) * w_dt
    io_bytes = tile_eff * (hidden + out_pad) * x_dt
    tmp_bytes = tile_eff * (hid_mult + hidden + out_pad) * 4
    vmem_limit = int(min(64 * 2**20,
                         max(32 * 2**20, 2 * (weight_bytes + io_bytes) + 2 * tmp_bytes)))

    cost = pl.CostEstimate(
        flops=2 * n * (hidden * hid_mult + hid_mult * hidden + hidden * out_pad),
        transcendentals=n * hid_mult,                 # GELU
        bytes_accessed=x2d.size * x_dt + n * out_pad * x_dt + weight_bytes,
    )

    full2d = lambda shape: pl.BlockSpec(shape, lambda i: (0, 0))

    out = pl.pallas_call(
        _output_layer_kernel,
        out_shape=jax.ShapeDtypeStruct((n, out_pad), features.dtype),
        grid_spec=pltpu.PrefetchScalarGridSpec(
            num_scalar_prefetch=0,
            grid=grid,
            in_specs=[
                pl.BlockSpec((tile_eff, hidden), lambda i: (i, 0)),  # x tile
                full2d((hidden, hid_mult)),                          # w1
                full2d((1, hid_mult)),                               # b1
                full2d((hid_mult, hidden)),                          # w2
                full2d((1, hidden)),                                 # b2
                full2d((hidden, out_pad)),                           # w3 (lane-padded)
                full2d((1, out_pad)),                                # b3 (lane-padded)
            ],
            out_specs=pl.BlockSpec((tile_eff, out_pad), lambda i: (i, 0)),
        ),
        compiler_params=pltpu.CompilerParams(
            dimension_semantics=("parallel",),
            vmem_limit_bytes=vmem_limit,
        ),
        cost_estimate=cost,
    )(x2d, w1, b1, w2, b2, w3, b3)

    out = out[:, :out_dim]
    return out.reshape(*orig_shape[:-1], out_dim)


def init_params(key, hidden_size, hidden_layer_multiplier, out_dim,
                dtype=jnp.float32):
    """Deterministic synthetic parameters (shapes match the PyTorch module)."""
    k1, k2, k3 = jax.random.split(key, 3)
    hid_mult = hidden_size * hidden_layer_multiplier
    scale1 = 1.0 / jnp.sqrt(hidden_size)
    scale2 = 1.0 / jnp.sqrt(hid_mult)
    w1 = (jax.random.normal(k1, (hidden_size, hid_mult)) * scale1).astype(dtype)
    b1 = jnp.zeros((1, hid_mult), dtype)
    w2 = (jax.random.normal(k2, (hid_mult, hidden_size)) * scale2).astype(dtype)
    b2 = jnp.zeros((1, hidden_size), dtype)
    w3 = (jax.random.normal(k3, (hidden_size, out_dim)) * scale1).astype(dtype)
    b3 = jnp.zeros((1, out_dim), dtype)
    return w1, b1, w2, b2, w3, b3


def reference_forward(features, w1, b1, w2, b2, w3, b3):
    h = jax.nn.gelu(features @ w1 + b1[0])
    h = h @ w2 + b2[0]
    return h @ w3 + b3[0]


if __name__ == "__main__":
    # Shapes implied by the module: hidden_size=32, output_hidden_layer_multiplier=2,
    # output_type='Vector' -> out_dim=3.
    hidden_size, mult, out_dim = 32, 2, 3

    key = jax.random.PRNGKey(0)
    kx, kn, kp = jax.random.split(key, 3)
    params = init_params(kp, hidden_size, mult, out_dim)

    # 2-D features: [num_nodes, hidden]
    feats2d = jax.random.normal(kx, (16, hidden_size), dtype=jnp.float32)
    out2d = jax.block_until_ready(output_layer_forward(feats2d, *params))
    ref2d = reference_forward(feats2d, *params)
    assert out2d.shape == (16, out_dim), out2d.shape
    assert jnp.allclose(out2d, ref2d, atol=1e-4, rtol=1e-4), \
        float(jnp.max(jnp.abs(out2d - ref2d)))

    # 3-D features: [num_nodes, max_neighbor, hidden] (exercises flatten + ragged tile)
    feats3d = jax.random.normal(kn, (6, 5, hidden_size), dtype=jnp.float32)
    out3d = jax.block_until_ready(output_layer_forward(feats3d, *params))
    ref3d = reference_forward(feats3d, *params)
    assert out3d.shape == (6, 5, out_dim), out3d.shape
    assert jnp.allclose(out3d, ref3d, atol=1e-4, rtol=1e-4), \
        float(jnp.max(jnp.abs(out3d - ref3d)))

    print("KERNEL_OK")
</pallas_src>

<mosaic_0001>
module attributes {stable_mosaic.version = 11 : i64} {
  func.func @_output_layer_kernel(%arg0: i32, %arg1: memref<16x32xf32, #tpu.memory_space<vmem>>, %arg2: memref<32x64xf32, #tpu.memory_space<vmem>>, %arg3: memref<1x64xf32, #tpu.memory_space<vmem>>, %arg4: memref<64x32xf32, #tpu.memory_space<vmem>>, %arg5: memref<1x32xf32, #tpu.memory_space<vmem>>, %arg6: memref<32x128xf32, #tpu.memory_space<vmem>>, %arg7: memref<1x128xf32, #tpu.memory_space<vmem>>, %arg8: memref<16x128xf32, #tpu.memory_space<vmem>>) attributes {dimension_semantics = [#tpu.dimension_semantics<parallel>], iteration_bounds = array<i64: 1>, scalar_prefetch = 0 : i64, scratch_operands = 0 : i64, tpu.core_type = #tpu.core_type<tc>, window_params = [{transform_indices = @transform_0, window_bounds = array<i64: 16, 32>}, {pipeline_mode = #tpu.pipeline_mode<synchronous>, transform_indices = @transform_1, window_bounds = array<i64: 32, 64>}, {pipeline_mode = #tpu.pipeline_mode<synchronous>, transform_indices = @transform_2, window_bounds = array<i64: 1, 64>}, {pipeline_mode = #tpu.pipeline_mode<synchronous>, transform_indices = @transform_3, window_bounds = array<i64: 64, 32>}, {pipeline_mode = #tpu.pipeline_mode<synchronous>, transform_indices = @transform_4, window_bounds = array<i64: 1, 32>}, {pipeline_mode = #tpu.pipeline_mode<synchronous>, transform_indices = @transform_5, window_bounds = array<i64: 32, 128>}, {pipeline_mode = #tpu.pipeline_mode<synchronous>, transform_indices = @transform_6, window_bounds = array<i64: 1, 128>}, {transform_indices = @transform_7, window_bounds = array<i64: 16, 128>}]} {
    %c0 = arith.constant 0 : index
    %c0_0 = arith.constant 0 : index
    %0 = vector.load %arg1[%c0, %c0_0] : memref<16x32xf32, #tpu.memory_space<vmem>>, vector<16x32xf32>
    %c0_1 = arith.constant 0 : index
    %c0_2 = arith.constant 0 : index
    %1 = vector.load %arg2[%c0_1, %c0_2] : memref<32x64xf32, #tpu.memory_space<vmem>>, vector<32x64xf32>
    %cst = arith.constant dense<0.000000e+00> : vector<16x64xf32>
    %2 = tpu.matmul %0, %1, %cst {dimension_numbers = #tpu.dot_dimension_numbers<[1], [0], [0], [1], [0, 0, 1, 1], [], []>} : vector<16x32xf32>, vector<32x64xf32>, vector<16x64xf32> -> vector<16x64xf32>
    %c0_3 = arith.constant 0 : index
    %c0_4 = arith.constant 0 : index
    %3 = vector.load %arg3[%c0_3, %c0_4] : memref<1x64xf32, #tpu.memory_space<vmem>>, vector<1x64xf32>
    %4 = vector.broadcast %3 : vector<1x64xf32> to vector<16x64xf32>
    %5 = arith.addf %2, %4 : vector<16x64xf32>
    %6 = arith.mulf %5, %5 : vector<16x64xf32>
    %7 = arith.mulf %5, %6 : vector<16x64xf32>
    %cst_5 = arith.constant 4.471500e-02 : f32
    %8 = vector.broadcast %cst_5 : f32 to vector<16x64xf32>
    %9 = arith.mulf %8, %7 : vector<16x64xf32>
    %10 = arith.addf %5, %9 : vector<16x64xf32>
    %cst_6 = arith.constant 0.797884583 : f32
    %11 = vector.broadcast %cst_6 : f32 to vector<16x64xf32>
    %12 = arith.mulf %11, %10 : vector<16x64xf32>
    %13 = math.tanh %12 : vector<16x64xf32>
    %cst_7 = arith.constant 1.000000e+00 : f32
    %14 = vector.broadcast %cst_7 : f32 to vector<16x64xf32>
    %15 = arith.addf %14, %13 : vector<16x64xf32>
    %cst_8 = arith.constant 5.000000e-01 : f32
    %16 = vector.broadcast %cst_8 : f32 to vector<16x64xf32>
    %17 = arith.mulf %16, %15 : vector<16x64xf32>
    %18 = arith.mulf %5, %17 : vector<16x64xf32>
    %c0_9 = arith.constant 0 : index
    %c0_10 = arith.constant 0 : index
    %19 = vector.load %arg4[%c0_9, %c0_10] : memref<64x32xf32, #tpu.memory_space<vmem>>, vector<64x32xf32>
    %cst_11 = arith.constant dense<0.000000e+00> : vector<16x32xf32>
    %20 = tpu.matmul %18, %19, %cst_11 {dimension_numbers = #tpu.dot_dimension_numbers<[1], [0], [0], [1], [0, 0, 1, 1], [], []>} : vector<16x64xf32>, vector<64x32xf32>, vector<16x32xf32> -> vector<16x32xf32>
    %c0_12 = arith.constant 0 : index
    %c0_13 = arith.constant 0 : index
    %21 = vector.load %arg5[%c0_12, %c0_13] : memref<1x32xf32, #tpu.memory_space<vmem>>, vector<1x32xf32>
    %22 = vector.broadcast %21 : vector<1x32xf32> to vector<16x32xf32>
    %23 = arith.addf %20, %22 : vector<16x32xf32>
    %c0_14 = arith.constant 0 : index
    %c0_15 = arith.constant 0 : index
    %24 = vector.load %arg6[%c0_14, %c0_15] : memref<32x128xf32, #tpu.memory_space<vmem>>, vector<32x128xf32>
    %cst_16 = arith.constant dense<0.000000e+00> : vector<16x128xf32>
    %25 = tpu.matmul %23, %24, %cst_16 {dimension_numbers = #tpu.dot_dimension_numbers<[1], [0], [0], [1], [0, 0, 1, 1], [], []>} : vector<16x32xf32>, vector<32x128xf32>, vector<16x128xf32> -> vector<16x128xf32>
    %c0_17 = arith.constant 0 : index
    %c0_18 = arith.constant 0 : index
    %26 = vector.load %arg7[%c0_17, %c0_18] : memref<1x128xf32, #tpu.memory_space<vmem>>, vector<1x128xf32>
    %27 = vector.broadcast %26 : vector<1x128xf32> to vector<16x128xf32>
    %28 = arith.addf %25, %27 : vector<16x128xf32>
    %c0_19 = arith.constant 0 : index
    %c0_20 = arith.constant 0 : index
    %29 = vector.load %arg8[%c0_19, %c0_20] : memref<16x128xf32, #tpu.memory_space<vmem>>, vector<16x128xf32>
    tpu.vector_store %arg8[%c0_19, %c0_20], %28 {strides = array<i32>} : memref<16x128xf32, #tpu.memory_space<vmem>>, vector<16x128xf32>,
    return
  }
  func.func @transform_0(%arg0: i32) -> (i32, i32) {
    %c0_i32 = arith.constant 0 : i32
    %c0_i32_0 = arith.constant 0 : i32
    return %arg0, %c0_i32 : i32, i32
  }
  func.func @transform_1(%arg0: i32) -> (i32, i32) {
    %c0_i32 = arith.constant 0 : i32
    %c0_i32_0 = arith.constant 0 : i32
    %c0_i32_1 = arith.constant 0 : i32
    return %c0_i32, %c0_i32_0 : i32, i32
  }
  func.func @transform_2(%arg0: i32) -> (i32, i32) {
    %c0_i32 = arith.constant 0 : i32
    %c0_i32_0 = arith.constant 0 : i32
    %c0_i32_1 = arith.constant 0 : i32
    return %c0_i32, %c0_i32_0 : i32, i32
  }
  func.func @transform_3(%arg0: i32) -> (i32, i32) {
    %c0_i32 = arith.constant 0 : i32
    %c0_i32_0 = arith.constant 0 : i32
    %c0_i32_1 = arith.constant 0 : i32
    return %c0_i32, %c0_i32_0 : i32, i32
  }
  func.func @transform_4(%arg0: i32) -> (i32, i32) {
    %c0_i32 = arith.constant 0 : i32
    %c0_i32_0 = arith.constant 0 : i32
    %c0_i32_1 = arith.constant 0 : i32
    return %c0_i32, %c0_i32_0 : i32, i32
  }
  func.func @transform_5(%arg0: i32) -> (i32, i32) {
    %c0_i32 = arith.constant 0 : i32
    %c0_i32_0 = arith.constant 0 : i32
    %c0_i32_1 = arith.constant 0 : i32
    return %c0_i32, %c0_i32_0 : i32, i32
  }
  func.func @transform_6(%arg0: i32) -> (i32, i32) {
    %c0_i32 = arith.constant 0 : i32
    %c0_i32_0 = arith.constant 0 : i32
    %c0_i32_1 = arith.constant 0 : i32
    return %c0_i32, %c0_i32_0 : i32, i32
  }
  func.func @transform_7(%arg0: i32) -> (i32, i32) {
    %c0_i32 = arith.constant 0 : i32
    %c0_i32_0 = arith.constant 0 : i32
    return %arg0, %c0_i32 : i32, i32
  }
}

</mosaic_0001>

<bundles_post_ra>
// kernel: output_layer_forward.1
= control target key start
LH: loop header
LB: loop body
LE: loop exit
PB: predicated region body
PF: predicated region fallthrough
CT: control target
= control target key end

     0   :  { %vm39_vm0 = vcmask 261120   ;;  %vm154_vm1 = vcmask 523264   ;;  %s523_s1 = inlined_call_operand.vmem [shape: f32[32,64], index: 1, kind: input, shape index: {}]   ;;  %s524_s0 = inlined_call_operand.vmem [shape: f32[16,32], index: 0, kind: input, shape index: {}]   ;;  %s525_s3 = inlined_call_operand.vmem [shape: f32[64,32], index: 3, kind: input, shape index: {}]   ;;  %s526_s5 = inlined_call_operand.vmem [shape: f32[32,128], index: 5, kind: input, shape index: {}]   ;;  %s527_s2 = inlined_call_operand.vmem [shape: f32[1,64], index: 2, kind: input, shape index: {}]   ;;  %s528_s4 = inlined_call_operand.vmem [shape: f32[1,32], index: 4, kind: input, shape index: {}]   ;;  %s529_s6 = inlined_call_operand.vmem [shape: f32[1,128], index: 6, kind: input, shape index: {}]   ;;  %s530_s7 = inlined_call_operand.vmem [shape: f32[16,128], index: 7, kind: output, shape index: {}]  }
   0x1   :  { %v31_v0 = vld [vmem:[%s523_s1 + $0x18] sm:$0xff]  ;;  %v30_v1 = vld [vmem:[%s523_s1 + $0x10] sm:$0xff]  ;;  %v26_v2 = vld [vmem:[%s524_s0] sm:$0xff] }
   0x2   :  { %365 = vmatprep.subr.mxu0 %v31_v0  ;;  %v29_v3 = vld [vmem:[%s523_s1 + $0x8] sm:$0xff]  ;;  %373 = vmatprep.mubr.msk.f32.mxu0 %vm39_vm0, %v26_v2  ;;  %v28_v4 = vld [vmem:[%s523_s1] sm:$0xff]  ;;  %v146_v6 = vld [vmem:[%s525_s3 + $0x38] sm:$0xff] }
   0x3   :  { %366 = vmatpush3.msra.mxu0 %v31_v0  ;;  %v27_v5 = vld [vmem:[%s524_s0 + $0x8] sm:$0xff]  ;;  %v145_v7 = vld [vmem:[%s525_s3 + $0x30] sm:$0xff]  ;;  %376 = vmatprep.subr.mxu1 %v146_v6  ;;  %v143_v9 = vld [vmem:[%s525_s3 + $0x20] sm:$0xff] }
   0x4   :  { %367 = vmatprep.subr.mxu0 %v30_v1  ;;  %377 = vmatpush3.msra.mxu1 %v146_v6  ;;  %v144_v8 = vld [vmem:[%s525_s3 + $0x28] sm:$0xff]  ;;  %v142_v10 = vld [vmem:[%s525_s3 + $0x18] sm:$0xff]  ;;  %v141_v11 = vld [vmem:[%s525_s3 + $0x10] sm:$0xff] }
   0x5   :  { %368 = vmatpush3.msra.mxu0 %v30_v1  ;;  %378 = vmatprep.subr.mxu1 %v145_v7  ;;  %v140_v12 = vld [vmem:[%s525_s3 + $0x8] sm:$0xff]  ;;  %v139_v13 = vld [vmem:[%s525_s3] sm:$0xff]  ;;  %v239_v14 = vld [vmem:[%s526_s5 + $0x18] sm:$0xff] }
   0x6   :  { %369 = vmatprep.subr.mxu0 %v29_v3  ;;  %379 = vmatpush3.msra.mxu1 %v145_v7  ;;  %v334_v15 = vld [vmem:[%s527_s2] ss:$0 sm:$0xff]  ;;  %v238_v38 = vld [vmem:[%s526_s5 + $0x10] sm:$0xff]  ;;  %v237_v39 = vld [vmem:[%s526_s5 + $0x8] sm:$0xff] }
   0x7   :  { %370 = vmatpush3.msra.mxu0 %v29_v3  ;;  %380 = vmatprep.subr.mxu1 %v144_v8  ;;  %v236_v40 = vld [vmem:[%s526_s5] sm:$0xff] }
   0x8   :  { %371 = vmatprep.subr.mxu0 %v28_v4  ;;  %381 = vmatpush3.msra.mxu1 %v144_v8  ;;  %v337_v42 = vld [vmem:[%s528_s4] ss:$0 sm:$0xff] }
   0x9   :  { %372 = vmatpush3.msra.mxu0 %v28_v4  ;;  %382 = vmatprep.subr.mxu1 %v143_v9  ;;  %v340_v46 = vld [vmem:[%s529_s6] ss:$0 sm:$0xff] }
   0xa   :  { %374 = vmatmul.mubr.msk.f32.vlgmr.msra.gmra.mxu0 %vm39_vm0, %v27_v5  ;;  %383 = vmatpush3.msra.mxu1 %v143_v9 }
   0xb   :  { %384 = vmatprep.subr.mxu1 %v142_v10  ;;  %395 = vmatprep.subr.mxu0 %v239_v14 }
   0xc   :  { %385 = vmatpush3.msra.mxu1 %v142_v10  ;;  %396 = vmatpush3.msra.mxu0 %v239_v14 }
   0xd   :  { %386 = vmatprep.subr.mxu1 %v141_v11  ;;  %397 = vmatprep.subr.mxu0 %v238_v38 }
   0xe   :  { %387 = vmatpush3.msra.mxu1 %v141_v11  ;;  %398 = vmatpush3.msra.mxu0 %v238_v38 }
   0xf   :  { %388 = vmatprep.subr.mxu1 %v140_v12  ;;  %399 = vmatprep.subr.mxu0 %v237_v39 }
  0x10   :  { %389 = vmatpush3.msra.mxu1 %v140_v12  ;;  %400 = vmatpush3.msra.mxu0 %v237_v39 }
  0x11   :  { %390 = vmatprep.subr.mxu1 %v139_v13  ;;  %401 = vmatprep.subr.mxu0 %v236_v40 }
  0x12   :  { %391 = vmatpush3.msra.mxu1 %v139_v13  ;;  %402 = vmatpush3.msra.mxu0 %v236_v40 }
  0xca   :  { %v375_v16 = vpop.f32.mrf.mxu0 }
  0xcb   :  { %v118_v17 = vadd.f32 %v375_v16, %v334_v15 }
  0xcc   :  { %v112_v18 = vpop.f32.mrf.mxu0 }
  0xcd   :  { %v122_v19 = vmul.f32 %v118_v17, %v118_v17  ;;  %v113_v20 = vadd.f32 %v334_v15, %v112_v18 }
  0xcf   :  { %v124_v21 = vmul.f32 %v122_v19, %v118_v17  ;;  %v121_v22 = vmul.f32 %v113_v20, %v113_v20 }
  0xd1   :  { %v126_v23 = vmul.f32 0.044715, %v124_v21  ;;  %v123_v24 = vmul.f32 %v121_v22, %v113_v20 }
  0xd3   :  { %v128_v25 = vadd.f32 %v126_v23, %v118_v17  ;;  %v125_v26 = vmul.f32 0.044715, %v123_v24 }
  0xd5   :  { %v130_v27 = vmul.f32 0.7978846, %v128_v25  ;;  %v127_v28 = vadd.f32 %v125_v26, %v113_v20 }
  0xd7   :  { %406 = vtanh.f32 %v130_v27  ;;  %v129_v29 = vmul.f32 0.7978846, %v127_v28 }
  0xd9   :  { %408 = vtanh.f32 %v129_v29 }
  0xe4   :  { %v407_v30 = vpop.eup %406 }
  0xe5   :  { %v134_v31 = vadd.f32 1.0, %v407_v30 }
  0xe6   :  { %v409_v32 = vpop.eup %408 }
  0xe7   :  { %v133_v33 = vadd.f32 1.0, %v409_v32  ;;  %v136_v34 = vmul.f32 0.5, %v134_v31 }
  0xe9   :  { %v135_v35 = vmul.f32 0.5, %v133_v33  ;;  %v138_v37 = vmul.f32 %v136_v34, %v118_v17 }
  0xeb   :  { %v137_v36 = vmul.f32 %v135_v35, %v113_v20 }
  0xed   :  { %392 = vmatprep.mubr.msk.f32.mxu1 %vm154_vm1, %v137_v36 }
  0xee   :  { %393 = vmatmul.mubr.msk.f32.vlgmr.msra.gmra.mxu1 %vm154_vm1, %v138_v37 }
 0x1ae   :  { %v394_v41 = vpop.f32.mrf.mxu1 }
 0x1af   :  { %v233_v45 = vadd.f32 %v394_v41, %v337_v42 }
 0x1b0   :  { %v227_v43 = vpop.f32.mrf.mxu1 }
 0x1b1   :  { %v228_v44 = vadd.f32 %v337_v42, %v227_v43 }
 0x1b3   :  { %403 = vmatprep.mubr.msk.f32.mxu0 %vm39_vm0, %v228_v44 }
 0x1b4   :  { %404 = vmatmul.mubr.msk.f32.vlgmr.msra.gmra.mxu0 %vm39_vm0, %v233_v45 }
 0x274   :  { %v405_v47 = vpop.f32.mrf.mxu0 }
 0x275   :  { %v325_v48 = vadd.f32 %v405_v47, %v340_v46 }
 0x276   :  { %v319_v49 = vpop.f32.mrf.mxu0 }
 0x277   :  { %329 = vst [vmem:[%s530_s7 + $0x8] sm:$0xff] %v325_v48  ;;  %v320_v50 = vadd.f32 %v340_v46, %v319_v49 }
 0x279   :  { %328 = vst [vmem:[%s530_s7] sm:$0xff] %v320_v50 }

</bundles_post_ra>
